<compile_context>
chip_gen: v5e
topology: v5e:2x2
jax: 0.10.0
libtpu: 0.0.40
codegen_flags: <defaults>
</compile_context>

<pallas_src>
import jax
import jax.numpy as jnp
from jax.experimental import pallas as pl
from jax.experimental.pallas import tpu as pltpu


def _add_pos_emb_kernel(x_ref, pos_ref, o_ref):
    # x_ref: (TB, TL, D), pos_ref: (1, TL, D), o_ref: (TB, TL, D).
    compute_dtype = o_ref.dtype  # promoted dtype of (x, pos_emb)
    x = x_ref[...].astype(compute_dtype)
    p = pos_ref[...].astype(compute_dtype)
    o_ref[...] = x + p  # VPU broadcast of (1, TL, D) over TB batch rows


_TILE_TARGET_BYTES = 6 * 1024 * 1024    # per x/out buffer (good on v7x/v6e/v5e)
_VMEM_BUDGET_BYTES = 40 * 1024 * 1024   # double-buffered footprint headroom


def _choose_tiles(B, L, D, x_itemsize, pos_itemsize, out_itemsize):
    """Pick (TB, TL): batch rows / sequence rows per block."""
    min_item = min(x_itemsize, pos_itemsize, out_itemsize)
    # Packed-sublane multiple: 8 for f32, 16 for bf16, 32 for int8/fp8.
    sub_mult = max(8, 32 // max(1, min_item))
    row_bytes = D * max(x_itemsize, out_itemsize)

    # --- rows per tile (TL) ---
    if L * row_bytes <= _TILE_TARGET_BYTES or L <= sub_mult:
        tl = L
    else:
        tl_cap = max(sub_mult, (_TILE_TARGET_BYTES // row_bytes) // sub_mult * sub_mult)
        tl_cap = min(tl_cap, L)
        # Prefer a divisor of L that is a multiple of sub_mult (dense last tile).
        best = 0
        d = sub_mult
        while d <= tl_cap:
            if L % d == 0:
                best = d
            d += sub_mult
        tl = best if best > 0 else tl_cap

    # --- batch rows per tile (TB): fill the byte target, prefer divisor of B ---
    slab_bytes = max(1, tl * row_bytes)
    tb_cap = min(B, max(1, _TILE_TARGET_BYTES // slab_bytes))
    tb = 1
    for cand in range(1, tb_cap + 1):
        if B % cand == 0:
            tb = cand

    # Shrink TB if the double-buffered footprint would exceed the VMEM budget.
    def footprint(tb_):
        x_buf = tb_ * tl * D * x_itemsize
        o_buf = tb_ * tl * D * out_itemsize
        p_buf = tl * D * pos_itemsize
        return 2 * (x_buf + o_buf + p_buf)

    while tb > 1 and footprint(tb) > _VMEM_BUDGET_BYTES:
        tb -= 1
        while tb > 1 and B % tb != 0:
            tb -= 1

    return tb, tl


def projector_forward(x: jax.Array, pos_emb: jax.Array, *, donate_x: bool = False) -> jax.Array:
    """Pallas equivalent of Projector.forward's base-class portion.

    Args:
      x:        (B, L, D) visual-backbone features.
      pos_emb:  (1, L, D) learned positional embedding.
      donate_x: alias x's HBM buffer to the output.  Only applied when the
                output (promoted) dtype equals x.dtype; x must not be read
                after the call.
    Returns:
      (B, L, D) tensor of dtype promote_types(x, pos_emb), equal to
      x + pos_emb broadcast over batch (matches torch, which captures the
      output dtype after the add).
    """
    B, L, D = x.shape
    assert pos_emb.shape == (1, L, D), pos_emb.shape

    out_dtype = jnp.promote_types(x.dtype, pos_emb.dtype)
    x_item = jnp.dtype(x.dtype).itemsize
    pos_item = jnp.dtype(pos_emb.dtype).itemsize
    out_item = jnp.dtype(out_dtype).itemsize

    TB, TL = _choose_tiles(B, L, D, x_item, pos_item, out_item)
    num_row_tiles = pl.cdiv(L, TL)
    num_batch_tiles = pl.cdiv(B, TB)

    cost = pl.CostEstimate(
        flops=B * L * D,
        transcendentals=0,
        bytes_accessed=(
            B * L * D * (x_item + out_item)   # read x + write out
            + L * D * pos_item                # read pos_emb once
        ),
    )

    kwargs = {}
    if donate_x and out_dtype == x.dtype:
        kwargs["input_output_aliases"] = {0: 0}

    return pl.pallas_call(
        _add_pos_emb_kernel,
        out_shape=jax.ShapeDtypeStruct((B, L, D), out_dtype),
        grid_spec=pltpu.PrefetchScalarGridSpec(
            num_scalar_prefetch=0,
            # Batch axis innermost: pos_emb's block index is constant across it,
            # so Pallas only re-fetches pos_emb when the row tile changes.
            grid=(num_row_tiles, num_batch_tiles),
            in_specs=[
                pl.BlockSpec((TB, TL, D), lambda l, b: (b, l, 0)),  # x
                pl.BlockSpec((1, TL, D), lambda l, b: (0, l, 0)),   # pos_emb
            ],
            out_specs=pl.BlockSpec((TB, TL, D), lambda l, b: (b, l, 0)),
        ),
        compiler_params=pltpu.CompilerParams(
            dimension_semantics=("parallel", "parallel"),
            vmem_limit_bytes=48 * 1024 * 1024,
        ),
        cost_estimate=cost,
        **kwargs,
    )(x, pos_emb)


def build_pos_embeds(key, num_input_tokens: int, vision_hidden_size: int) -> jax.Array:
    """JAX equivalent of torch build_pos_embeds (zeros param + trunc_normal_(std=0.02)).

    torch's trunc_normal_(std=0.02, a=-2, b=2) truncates at absolute +/-2
    (+/-100 sigma, effectively untruncated); jax truncates at +/-2 sigma before
    scaling.  For std=0.02 the distributions are numerically indistinguishable.
    """
    tn = jax.random.truncated_normal(
        key, -2.0, 2.0, (1, num_input_tokens, vision_hidden_size), dtype=jnp.float32
    )
    return tn * 0.02


if __name__ == "__main__":
    # Small, lane-dense test shapes (D multiple of 128 -> unmasked stores).
    B, L, D = 4, 16, 128

    key = jax.random.PRNGKey(0)
    k_x, k_pos, k_bf = jax.random.split(key, 3)

    x = jax.random.normal(k_x, (B, L, D), dtype=jnp.float32)
    pos_emb = build_pos_embeds(k_pos, L, D)

    # f32 + f32 -> f32
    ref = (x + pos_emb).astype(jnp.float32)
    out = jax.block_until_ready(projector_forward(x, pos_emb))
    assert out.shape == (B, L, D)
    assert out.dtype == jnp.float32
    assert jnp.allclose(out, ref, atol=1e-6, rtol=1e-6)

    # Mixed dtypes: bf16 x + f32 pos -> f32 output (torch captures dtype after
    # the add, i.e. the promoted dtype that _forward would receive).
    x_bf = jax.random.normal(k_bf, (B, L, D), dtype=jnp.bfloat16)
    ref_mixed = x_bf.astype(jnp.float32) + pos_emb
    out_mixed = jax.block_until_ready(projector_forward(x_bf, pos_emb))
    assert out_mixed.dtype == jnp.float32
    assert jnp.allclose(out_mixed, ref_mixed, atol=1e-2, rtol=1e-2)

    # Pure bf16 path: compute stays bf16 (halved HBM traffic), bf16 output.
    pos_bf = pos_emb.astype(jnp.bfloat16)
    ref_bf = (x_bf + pos_bf).astype(jnp.float32)
    out_bf = jax.block_until_ready(projector_forward(x_bf, pos_bf))
    assert out_bf.dtype == jnp.bfloat16
    assert jnp.allclose(out_bf.astype(jnp.float32), ref_bf, atol=1e-2, rtol=1e-2)

    # Donation path (x not used afterwards; ref materialized beforehand).
    x_don = jax.random.normal(jax.random.PRNGKey(7), (B, L, D), dtype=jnp.float32)
    ref_don = jax.block_until_ready(x_don + pos_emb)
    out_don = jax.block_until_ready(projector_forward(x_don, pos_emb, donate_x=True))
    assert jnp.allclose(out_don, ref_don, atol=1e-6, rtol=1e-6)

    print("KERNEL_OK")
</pallas_src>

<mosaic_0001>
module attributes {stable_mosaic.version = 11 : i64} {
  func.func @_add_pos_emb_kernel(%arg0: i32, %arg1: i32, %arg2: memref<4x16x128xf32, #tpu.memory_space<vmem>>, %arg3: memref<1x16x128xf32, #tpu.memory_space<vmem>>, %arg4: memref<4x16x128xf32, #tpu.memory_space<vmem>>) attributes {dimension_semantics = [#tpu.dimension_semantics<parallel>, #tpu.dimension_semantics<parallel>], iteration_bounds = array<i64: 1, 1>, scalar_prefetch = 0 : i64, scratch_operands = 0 : i64, tpu.core_type = #tpu.core_type<tc>, window_params = [{transform_indices = @transform_0, window_bounds = array<i64: 4, 16, 128>}, {transform_indices = @transform_1, window_bounds = array<i64: 1, 16, 128>}, {transform_indices = @transform_2, window_bounds = array<i64: 4, 16, 128>}]} {
    %c0 = arith.constant 0 : index
    %c0_0 = arith.constant 0 : index
    %c0_1 = arith.constant 0 : index
    %0 = vector.load %arg2[%c0, %c0_0, %c0_1] : memref<4x16x128xf32, #tpu.memory_space<vmem>>, vector<4x16x128xf32>
    %c0_2 = arith.constant 0 : index
    %c0_3 = arith.constant 0 : index
    %c0_4 = arith.constant 0 : index
    %1 = vector.load %arg3[%c0_2, %c0_3, %c0_4] : memref<1x16x128xf32, #tpu.memory_space<vmem>>, vector<1x16x128xf32>
    %2 = vector.broadcast %1 : vector<1x16x128xf32> to vector<4x16x128xf32>
    %3 = arith.addf %0, %2 : vector<4x16x128xf32>
    %c0_5 = arith.constant 0 : index
    %c0_6 = arith.constant 0 : index
    %c0_7 = arith.constant 0 : index
    %4 = vector.load %arg4[%c0_5, %c0_6, %c0_7] : memref<4x16x128xf32, #tpu.memory_space<vmem>>, vector<4x16x128xf32>
    tpu.vector_store %arg4[%c0_5, %c0_6, %c0_7], %3 {strides = array<i32>} : memref<4x16x128xf32, #tpu.memory_space<vmem>>, vector<4x16x128xf32>,
    return
  }
  func.func @transform_0(%arg0: i32, %arg1: i32) -> (i32, i32, i32) {
    %c0_i32 = arith.constant 0 : i32
    %c0_i32_0 = arith.constant 0 : i32
    return %arg1, %arg0, %c0_i32 : i32, i32, i32
  }
  func.func @transform_1(%arg0: i32, %arg1: i32) -> (i32, i32, i32) {
    %c0_i32 = arith.constant 0 : i32
    %c0_i32_0 = arith.constant 0 : i32
    %c0_i32_1 = arith.constant 0 : i32
    return %c0_i32, %arg0, %c0_i32_0 : i32, i32, i32
  }
  func.func @transform_2(%arg0: i32, %arg1: i32) -> (i32, i32, i32) {
    %c0_i32 = arith.constant 0 : i32
    %c0_i32_0 = arith.constant 0 : i32
    return %arg1, %arg0, %c0_i32 : i32, i32, i32
  }
}

</mosaic_0001>

<bundles_post_ra>
// kernel: tpu_custom_call.1
= control target key start
LH: loop header
LB: loop body
LE: loop exit
PB: predicated region body
PF: predicated region fallthrough
CT: control target
= control target key end

     0   :  { %7 = vsyncpa [#allocation3], 0  ;;  %s211_s0 = inlined_call_operand.hbm [shape: f32[4,16,128], index: 0, kind: input, shape index: {}]   ;;  %s212_s1 = inlined_call_operand.hbm [shape: f32[1,16,128], index: 1, kind: input, shape index: {}]   ;;  %s213_s2 = inlined_call_operand.hbm [shape: f32[4,16,128], index: 2, kind: output, shape index: {}]  }
   0x1   :  { %8 = vsyncpa [#allocation6], 0 }
   0x2   :  { %9 = vsyncpa [#allocation4], 0  ;;  %s14_s11 = sshll.u32 %s211_s0, 4  ;;  %s173_s12 = smov [#allocation2]   ;;  %s15_s11 = int_to_ptr.hbm [resolvable:$true] %s14_s11 }
   0x3   :  { %s16_s13 = sshll.u32 %s173_s12, 4  ;;  %s27_s16 = sshll.u32 %s212_s1, 4  ;;  %s17_s13 = int_to_ptr.vmem [resolvable:$true] %s16_s13  ;;  %s28_s16 = int_to_ptr.hbm [resolvable:$true] %s27_s16 }
   0x4   :  { %s174_s17 = smov 128   ;;  %s175_s18 = smov 8  }
   0x5   :  { %22 = dma.hbm_to_vmem [thread:$0]  %s15_s11, 1024, %s17_s13, [#allocation3], %s174_s17, %s174_s17, %s175_s18  }
   0x6   :  { %s176_s19 = smov [#allocation5]  }
   0x7   :  { %s29_s20 = sshll.u32 %s176_s19, 4  ;;  %s30_s20 = int_to_ptr.vmem [resolvable:$true] %s29_s20 }
   0x8   :  { %35 = dma.hbm_to_vmem [thread:$0]  %s28_s16, 256, %s30_s20, [#allocation6], %s174_s17, %s174_s17, %s175_s18  }
   0x9   :  { %167 = dma.done.wait [#allocation3], 1024  }
   0xa   :  { %168 = vsyncadd [#allocation3], 4294966272 }
   0xb   :  { %169 = dma.done.wait [#allocation6], 256  }
   0xc   :  { %170 = vsyncadd [#allocation6], 4294967040  ;;  %v44_v0 = vld [vmem:[#allocation2] sm:$0xff]  ;;  %v45_v2 = vld [vmem:[#allocation2 + $0x8] sm:$0xff]  ;;  %s177_s0 = smov [#allocation7]   ;;  %s76_s23 = sshll.u32 %s213_s2, 4  ;;  %s77_s23 = int_to_ptr.hbm [resolvable:$true] %s76_s23 }
   0xd   :  { %v52_v1 = vld [vmem:[#allocation5] sm:$0xff]  ;;  %v53_v4 = vld [vmem:[#allocation5 + $0x8] sm:$0xff]  ;;  %v46_v5 = vld [vmem:[#allocation2 + $0x10] sm:$0xff]  ;;  %s74_s1 = sshll.u32 %s177_s0, 4  ;;  %s75_s1 = int_to_ptr.vmem [resolvable:$true] %s74_s1 }
   0xe   :  { %v54_v3 = vadd.f32 %v52_v1, %v44_v0  ;;  %v47_v6 = vld [vmem:[#allocation2 + $0x18] sm:$0xff]  ;;  %v55_v7 = vadd.f32 %v53_v4, %v45_v2  ;;  %v56_v8 = vadd.f32 %v52_v1, %v46_v5  ;;  %v48_v10 = vld [vmem:[#allocation2 + $0x20] sm:$0xff]  ;;  %v49_v11 = vld [vmem:[#allocation2 + $0x28] sm:$0xff] }
   0xf   :  { %v57_v9 = vadd.f32 %v53_v4, %v47_v6  ;;  %v50_v12 = vld [vmem:[#allocation2 + $0x30] sm:$0xff]  ;;  %v58_v13 = vadd.f32 %v52_v1, %v48_v10  ;;  %v51_v14 = vld [vmem:[#allocation2 + $0x38] sm:$0xff]  ;;  %v59_v15 = vadd.f32 %v53_v4, %v49_v11 }
  0x10   :  { %62 = vst [vmem:[#allocation7] sm:$0xff] %v54_v3  ;;  %v60_v16 = vadd.f32 %v52_v1, %v50_v12  ;;  %v61_v17 = vadd.f32 %v53_v4, %v51_v14 }
  0x11   :  { %63 = vst [vmem:[#allocation7 + $0x8] sm:$0xff] %v55_v7 }
  0x12   :  { %64 = vst [vmem:[#allocation7 + $0x10] sm:$0xff] %v56_v8 }
  0x13   :  { %65 = vst [vmem:[#allocation7 + $0x18] sm:$0xff] %v57_v9 }
  0x14   :  { %66 = vst [vmem:[#allocation7 + $0x20] sm:$0xff] %v58_v13 }
  0x15   :  { %67 = vst [vmem:[#allocation7 + $0x28] sm:$0xff] %v59_v15 }
  0x16   :  { %68 = vst [vmem:[#allocation7 + $0x30] sm:$0xff] %v60_v16 }
  0x17   :  { %69 = vst [vmem:[#allocation7 + $0x38] sm:$0xff] %v61_v17 }
  0x18   :  { %82 = dma.vmem_to_hbm [thread:$0]  %s75_s1, 1024, %s77_s23, [#allocation4], %s174_s17, %s174_s17, %s175_s18  }
  0x19   :  { %171 = dma.done.wait [#allocation4], 1024  }
  0x1a   :  { %172 = vsyncadd [#allocation4], 4294966272 }
  0x1b   :  { %87 = vsyncpa [#allocation3], 1 }
  0x1c   :  { %88 = vsyncpa [#allocation6], 1 }
  0x1d   :  { %89 = vsyncpa [#allocation4], 1 }

</bundles_post_ra>
